<compile_context>
chip_gen: v7x
topology: tpu7x:2x2x1
jax: 0.10.0
libtpu: 0.0.40
codegen_flags: <defaults>
</compile_context>

<pallas_src>
import functools
import math

import jax
import jax.numpy as jnp
import numpy as np
from jax.experimental import pallas as pl
from jax.experimental.pallas import tpu as pltpu


def _round_up(a, b):
    return -(-a // b) * b


# ----------------------------------------------------------------------------
# Parameter construction (PyTorch nn.Linear default init, weights stored (in, out))
# ----------------------------------------------------------------------------
def _linear_init(key, fan_in, fan_out):
    kw, kb = jax.random.split(key)
    bound = 1.0 / math.sqrt(fan_in)
    w = jax.random.uniform(kw, (fan_in, fan_out), jnp.float32, -bound, bound)
    b = jax.random.uniform(kb, (fan_out,), jnp.float32, -bound, bound)
    return w, b


def build_ff_residual_params(key, dim):
    k1, k2 = jax.random.split(key)
    w1, b1 = _linear_init(k1, dim, dim)
    w2, b2 = _linear_init(k2, dim, dim)
    return w1, b1, w2, b2


# ----------------------------------------------------------------------------
# Lane packing: fold `pack` rows of width dim_p into one 128-lane-dense row.
# ----------------------------------------------------------------------------
def _choose_packing(dim):
    """Return (pack, dim_p). lane_w = pack * dim_p is a multiple of 128."""
    if dim % 128 == 0:
        return 1, dim
    lcm = dim * 128 // math.gcd(dim, 128)
    if lcm <= 512:
        return lcm // dim, dim
    # Fallback: zero-pad the feature dim up to a multiple of 128 so stores stay
    # unmasked full-width vst (costs one feature-padded activation copy).
    return 1, _round_up(dim, 128)


def pack_ff_residual_params(w1, b1, w2, b2):
    """One-time packing of both Linear layers into a single lane-dense block.

    Hoisted out of the per-call wrapper so repeated / scanned forwards don't redo
    the kron / tile / concatenate (and the HBM write of the packed weights).
    [a|b] @ blockdiag(W, W) == [a@W | b@W], so the math is bit-identical.
    """
    dim = int(w1.shape[0])
    pack, dim_p = _choose_packing(dim)
    lane_w = pack * dim_p

    def pad_w(w):
        w = jnp.asarray(w, jnp.float32)
        if dim_p != dim:
            w = jnp.pad(w, ((0, dim_p - dim), (0, dim_p - dim)))
        return w

    def pad_b(b):
        b = jnp.asarray(b, jnp.float32)
        if dim_p != dim:
            b = jnp.pad(b, ((0, dim_p - dim),))
        return b

    w1p, w2p = pad_w(w1), pad_w(w2)
    b1p, b2p = pad_b(b1), pad_b(b2)
    if pack > 1:
        eye = jnp.eye(pack, dtype=jnp.float32)
        w1p = jnp.kron(eye, w1p)
        w2p = jnp.kron(eye, w2p)
    b1p = jnp.tile(b1p.reshape(1, dim_p), (1, pack))
    b2p = jnp.tile(b2p.reshape(1, dim_p), (1, pack))

    return {
        "w_all": jnp.concatenate([w1p, w2p], axis=1),   # (lane_w, 2*lane_w)
        "b_all": jnp.concatenate([b1p, b2p], axis=1),   # (1, 2*lane_w)
        "dim": dim, "dim_p": dim_p, "pack": pack, "lane_w": lane_w,
    }


# ----------------------------------------------------------------------------
# Pallas kernel: one tile of (packed) rows, whole block fused in VMEM.
# ----------------------------------------------------------------------------
def _ffres_kernel(x_ref, w_ref, b_ref, o_ref, *, lane_w):
    x = x_ref[...]                       # (tile_p, lane_w) f32
    w1 = w_ref[:, :lane_w]               # static slices at lane boundary: free views
    w2 = w_ref[:, lane_w:]
    b1 = b_ref[:, :lane_w]
    b2 = b_ref[:, lane_w:]

    # TODO(synk): on v5e only, cast x / w to bf16 at the two dots (keep
    # preferred_element_type=f32) if profiling shows the vmatmul slot binding.
    y = jnp.dot(x, w1, preferred_element_type=jnp.float32) + b1
    y = jnp.maximum(y, 0.0)
    y = jnp.dot(y, w2, preferred_element_type=jnp.float32) + b2
    o_ref[...] = x + y


# ----------------------------------------------------------------------------
# Wrapper
# ----------------------------------------------------------------------------
def ff_residual_block_packed(x, packed, *, target_block_bytes=4 * 1024 * 1024):
    """x: (..., dim) -> same shape/dtype, using pre-packed params from
    pack_ff_residual_params()."""
    dim, dim_p = packed["dim"], packed["dim_p"]
    pack, lane_w = packed["pack"], packed["lane_w"]
    orig_shape, orig_dtype = x.shape, x.dtype
    assert orig_shape[-1] == dim

    M = int(np.prod(orig_shape[:-1])) if len(orig_shape) > 1 else 1
    x2 = x.reshape(M, dim).astype(jnp.float32)

    if dim_p != dim:
        # Fallback path (dim with no small lcm with 128): feature-padded copy.
        x2 = jnp.pad(x2, ((0, 0), (0, dim_p - dim)))

    # Pad rows ONLY up to the next multiple of `pack` (skipped when divisible).
    # The ragged final row block is left to the Pallas pipeline: OOB input rows
    # never mix with valid rows (matmul contracts over the lane axis only) and
    # OOB output rows are masked, so no pad-to-tile / trailing slice is needed.
    m_packed = -(-M // pack)
    rows = m_packed * pack
    if rows != M:
        x2 = jnp.pad(x2, ((0, rows - M), (0, 0)))
    x_packed = x2.reshape(m_packed, lane_w)              # free row-major reshape

    # Row tile: multi-MiB blocks amortize the ~0.35 us/step pipeline overhead,
    # capped so grid_len >= 2 whenever possible (v7x megacore sharding).
    target_tile_p = max(8, (target_block_bytes // (lane_w * 4)) // 8 * 8)
    half_up = max(8, _round_up(-(-m_packed // 2), 8))
    tile_p = min(target_tile_p, half_up)
    grid_len = -(-m_packed // tile_p)

    # VMEM budget: 2x double-buffered input + 2x output blocks, double-buffered
    # weights/biases, ~2 (tile_p, lane_w) f32 matmul intermediates; +25% headroom,
    # clamped under v7x's 64 MiB physical VMEM.
    block_bytes = tile_p * lane_w * 4
    w_bytes = 2 * (lane_w * 2 * lane_w * 4 + 2 * lane_w * 4)
    vmem_needed = 6 * block_bytes + w_bytes
    vmem_limit = int(min(max(vmem_needed * 5 // 4, 32 * 1024 * 1024),
                         56 * 1024 * 1024))

    kernel = functools.partial(_ffres_kernel, lane_w=lane_w)

    out = pl.pallas_call(
        kernel,
        out_shape=jax.ShapeDtypeStruct((m_packed, lane_w), jnp.float32),
        grid_spec=pltpu.PrefetchScalarGridSpec(
            num_scalar_prefetch=0,
            grid=(grid_len,),
            in_specs=[
                pl.BlockSpec((tile_p, lane_w), lambda i: (i, 0)),       # row tiles
                # TODO(synk): single-buffer the invariant weight/bias blocks
                # (pl.Buffered(1)) and add a column-tiling "arbitrary" grid axis
                # once dim >= ~1024 makes the resident weights VMEM-significant.
                pl.BlockSpec((lane_w, 2 * lane_w), lambda i: (0, 0)),   # weights
                pl.BlockSpec((1, 2 * lane_w), lambda i: (0, 0)),        # biases
            ],
            out_specs=pl.BlockSpec((tile_p, lane_w), lambda i: (i, 0)),
        ),
        compiler_params=pltpu.CompilerParams(
            dimension_semantics=("parallel",),     # megacore shards the row axis
            vmem_limit_bytes=vmem_limit,
        ),
    )(x_packed, packed["w_all"], packed["b_all"])

    out = out.reshape(rows, dim_p)
    if rows != M:
        out = out[:M]
    if dim_p != dim:
        out = out[:, :dim]
    return out.reshape(orig_shape).astype(orig_dtype)


def ff_residual_block(x, w1, b1, w2, b2, **kwargs):
    """Convenience one-shot API; prefer pack_ff_residual_params + *_packed in loops."""
    return ff_residual_block_packed(x, pack_ff_residual_params(w1, b1, w2, b2), **kwargs)


# ----------------------------------------------------------------------------
# Pure-JAX reference (mirrors the PyTorch forward exactly)
# ----------------------------------------------------------------------------
def reference_forward(x, w1, b1, w2, b2):
    y = jnp.maximum(x.astype(jnp.float32) @ w1 + b1, 0.0)
    y = y @ w2 + b2
    return (x.astype(jnp.float32) + y).astype(x.dtype)


if __name__ == "__main__":
    key = jax.random.PRNGKey(0)
    kparam, kdata = jax.random.split(key)

    # Primary case: FFResidualBlock(dim=64), batch=2, seq=80.
    dim = 64
    w1, b1, w2, b2 = build_ff_residual_params(kparam, dim)
    packed = pack_ff_residual_params(w1, b1, w2, b2)   # packed once, reused per call
    x = jax.random.normal(kdata, (2, 80, dim), jnp.float32)

    out = jax.block_until_ready(ff_residual_block_packed(x, packed))
    ref = reference_forward(x, w1, b1, w2, b2)
    assert out.shape == x.shape and out.dtype == x.dtype
    assert jnp.allclose(out, ref, atol=1e-4, rtol=1e-4), "mismatch vs reference (dim=64)"

    # Secondary checks: generalized lane packing (dim=48 -> lane_w=384, exercises a
    # ragged final row block) and the feature-pad fallback (dim=100 -> lane_w=128).
    for d in (48, 100):
        kp, kd = jax.random.split(jax.random.fold_in(key, d))
        wa, ba, wb, bb = build_ff_residual_params(kp, d)
        xd = jax.random.normal(kd, (2, 80, d), jnp.float32)
        od = jax.block_until_ready(ff_residual_block(xd, wa, ba, wb, bb))
        rd = reference_forward(xd, wa, ba, wb, bb)
        assert od.shape == xd.shape
        assert jnp.allclose(od, rd, atol=1e-4, rtol=1e-4), f"mismatch vs reference (dim={d})"

    print("KERNEL_OK")
</pallas_src>

<mosaic_0001>
module attributes {stable_mosaic.version = 11 : i64} {
  func.func @_ffres_kernel(%arg0: i32, %arg1: memref<40x128xf32, #tpu.memory_space<vmem>>, %arg2: memref<128x256xf32, #tpu.memory_space<vmem>>, %arg3: memref<1x256xf32, #tpu.memory_space<vmem>>, %arg4: memref<40x128xf32, #tpu.memory_space<vmem>>) attributes {dimension_semantics = [#tpu.dimension_semantics<parallel>], iteration_bounds = array<i64: 2>, scalar_prefetch = 0 : i64, scratch_operands = 0 : i64, tpu.core_type = #tpu.core_type<tc>, window_params = [{transform_indices = @transform_0, window_bounds = array<i64: 40, 128>}, {pipeline_mode = #tpu.pipeline_mode<synchronous>, transform_indices = @transform_1, window_bounds = array<i64: 128, 256>}, {pipeline_mode = #tpu.pipeline_mode<synchronous>, transform_indices = @transform_2, window_bounds = array<i64: 1, 256>}, {transform_indices = @transform_3, window_bounds = array<i64: 40, 128>}]} {
    %c0 = arith.constant 0 : index
    %c0_0 = arith.constant 0 : index
    %0 = vector.load %arg1[%c0, %c0_0] : memref<40x128xf32, #tpu.memory_space<vmem>>, vector<40x128xf32>
    %c0_1 = arith.constant 0 : index
    %c0_2 = arith.constant 0 : index
    %1 = vector.load %arg2[%c0_1, %c0_2] : memref<128x256xf32, #tpu.memory_space<vmem>>, vector<128x128xf32>
    %c0_3 = arith.constant 0 : index
    %c128 = arith.constant 128 : index
    %2 = vector.load %arg2[%c0_3, %c128] : memref<128x256xf32, #tpu.memory_space<vmem>>, vector<128x128xf32>
    %c0_4 = arith.constant 0 : index
    %c0_5 = arith.constant 0 : index
    %3 = vector.load %arg3[%c0_4, %c0_5] : memref<1x256xf32, #tpu.memory_space<vmem>>, vector<1x128xf32>
    %c0_6 = arith.constant 0 : index
    %c128_7 = arith.constant 128 : index
    %4 = vector.load %arg3[%c0_6, %c128_7] : memref<1x256xf32, #tpu.memory_space<vmem>>, vector<1x128xf32>
    %cst = arith.constant dense<0.000000e+00> : vector<40x128xf32>
    %5 = tpu.matmul %0, %1, %cst {dimension_numbers = #tpu.dot_dimension_numbers<[1], [0], [0], [1], [0, 0, 1, 1], [], []>} : vector<40x128xf32>, vector<128x128xf32>, vector<40x128xf32> -> vector<40x128xf32>
    %6 = vector.broadcast %3 : vector<1x128xf32> to vector<40x128xf32>
    %7 = arith.addf %5, %6 : vector<40x128xf32>
    %cst_8 = arith.constant 0.000000e+00 : f32
    %8 = vector.broadcast %cst_8 : f32 to vector<40x128xf32>
    %9 = arith.maximumf %7, %8 : vector<40x128xf32>
    %cst_9 = arith.constant dense<0.000000e+00> : vector<40x128xf32>
    %10 = tpu.matmul %9, %2, %cst_9 {dimension_numbers = #tpu.dot_dimension_numbers<[1], [0], [0], [1], [0, 0, 1, 1], [], []>} : vector<40x128xf32>, vector<128x128xf32>, vector<40x128xf32> -> vector<40x128xf32>
    %11 = vector.broadcast %4 : vector<1x128xf32> to vector<40x128xf32>
    %12 = arith.addf %10, %11 : vector<40x128xf32>
    %13 = arith.addf %0, %12 : vector<40x128xf32>
    %c0_10 = arith.constant 0 : index
    %c0_11 = arith.constant 0 : index
    %14 = vector.load %arg4[%c0_10, %c0_11] : memref<40x128xf32, #tpu.memory_space<vmem>>, vector<40x128xf32>
    tpu.vector_store %arg4[%c0_10, %c0_11], %13 {strides = array<i32>} : memref<40x128xf32, #tpu.memory_space<vmem>>, vector<40x128xf32>,
    return
  }
  func.func @transform_0(%arg0: i32) -> (i32, i32) {
    %c0_i32 = arith.constant 0 : i32
    %c0_i32_0 = arith.constant 0 : i32
    return %arg0, %c0_i32 : i32, i32
  }
  func.func @transform_1(%arg0: i32) -> (i32, i32) {
    %c0_i32 = arith.constant 0 : i32
    %c0_i32_0 = arith.constant 0 : i32
    %c0_i32_1 = arith.constant 0 : i32
    return %c0_i32, %c0_i32_0 : i32, i32
  }
  func.func @transform_2(%arg0: i32) -> (i32, i32) {
    %c0_i32 = arith.constant 0 : i32
    %c0_i32_0 = arith.constant 0 : i32
    %c0_i32_1 = arith.constant 0 : i32
    return %c0_i32, %c0_i32_0 : i32, i32
  }
  func.func @transform_3(%arg0: i32) -> (i32, i32) {
    %c0_i32 = arith.constant 0 : i32
    %c0_i32_0 = arith.constant 0 : i32
    return %arg0, %c0_i32 : i32, i32
  }
}

</mosaic_0001>

<bundles_post_ra>
// kernel: tpu_custom_call.1
= control target key start
LH: loop header
LB: loop body
LE: loop exit
PB: predicated region body
PF: predicated region fallthrough
CT: control target
= control target key end

     0   :  { %8 = vsyncpa [#allocation3], 0  ;;  %s1235_s0 = inlined_call_operand.hbm [shape: f32[80,128], index: 0, kind: input, shape index: {}]   ;;  %s1236_s1 = inlined_call_operand.hbm [shape: f32[128,256], index: 1, kind: input, shape index: {}]   ;;  %s1237_s2 = inlined_call_operand.vmem [shape: f32[1,256], index: 2, kind: input, shape index: {}]   ;;  %s1238_s3 = inlined_call_operand.hbm [shape: f32[80,128], index: 3, kind: output, shape index: {}]  }
   0x1   :  { %10 = vsyncpa [#allocation3 + $0x1], 0 }
   0x2   :  { %11 = vsyncpa [#allocation6], 0 }
   0x3   :  { %12 = vsyncpa [#allocation4], 0 }
   0x4   :  { %14 = vsyncpa [#allocation4 + $0x1], 0  ;;  %s977_s12 = smov 0   ;;  %s979_s13 = smov 0  }
   0x5   :  { %s981_s14 = smov 0   ;;  %s983_s15 = smov 0  }
   0x6 LB: > { %s998_s16 = sadd.s32 4294967295, %s943_s15   ;;  %s549_s17 = sadd.s32 4294967294, %s943_s15   ;;  %s943_s15 = sphi %s983_s15, %s1258_s15   ;;  %s939_s14 = sphi %s981_s14, %s1257_s14   ;;  %s935_s13 = sphi %s979_s13, %s1256_s13   ;;  %s931_s12 = sphi %s977_s12, %s1255_s12  }
   0x7   : > { %p40_p0 = scmp.ne.s32.totalorder %s935_s13, %s931_s12  ;;  %p1239_p1 = scmp.eq.s32.totalorder %s998_s16, 0 }
   0x8   : > { %p112_p3 = scmp.eq.s32.totalorder %s549_s17, 1  ;;  %p550_p5 = scmp.ge.s32.totalorder %s943_s15, 1 }
   0x9   : > { %p1007_p4 = por %p1239_p1, %p40_p0  ;;  %p119_p7 = scmp.lt.s32.totalorder %s943_s15, 3 }
   0xa   : > { %p1012_p6 = por %p112_p3, %p40_p0  ;;  %s945_s21 = smov [#allocation5]  }
   0xb   : > { %s1242_s18 = scalar_select %p1007_p4, 1, 0 }
   0xc   : > { %s1243_s19 = scalar_select %p1012_p6, 1, 0 }
   0xd   : > { %p1017_p8 = pnand %p550_p5, %p119_p7  ;;  %s131_s22 = sshll.u32 %s945_s21, 4  ;;  %s1021_s22 = int_to_ptr.vmem [resolvable:$true] %s131_s22 }
   0xe   : > { %s1033_s24 = sadd.s32 1, %s943_s15   ;;  %s27_s25 = sadd.s32 1, %s939_s14 }
   0xf   : > { %s1244_s20 = scalar_select %p1017_p8, 1, 0 }
  0x10   : > { %p757_p9 = pneg %p1017_p8  ;;  %s24_s26 = ssub.s32 %s943_s15, %s1033_s24 }
  0x11   : > { %s815_s29 = scalar_lea.hbm %s1236_s1, 4096 }
  0x12   : > { %p1028_p11 = pnand %p757_p9, %p1239_p1  ;;  %p816_p12 = scmp.ne.s32.totalorder %s1236_s1, %s815_s29 }
  0x13   : > { %p822_p5 = scmp.lt.u32.totalorder %s815_s29, %s1236_s1 }
  0x14   : > { %p817_p13 = pneg %p1028_p11 }
  0x16   : > { %p818_p0 = pnand %p817_p13, %p816_p12 }
  0x18   : > { %p819_p3 = pneg %p818_p0 }
  0x1a   : > { %p824_p7 = pnand %p822_p5, %p819_p3 }
  0x1c   : > { %827 = shalt.err (!%p824_p7)
}
  0x1d   : > { %s828_s7 = scalar_lea.vmem %s1021_s22, 4096  ;;  %p836_p2 = scmp.lt.s32.totalorder %s1021_s22, %s1021_s22 }
  0x1e   : > { %p829_p9 = scmp.ne.s32.totalorder %s1021_s22, %s828_s7  ;;  %p837_p6 = scmp.lt.s32.totalorder %s828_s7, %s828_s7 }
  0x20   : > { %p831_p10 = pnand %p829_p9, %p817_p13  ;;  %p838_p4 = por %p837_p6, %p836_p2 }
  0x22   : > { %p832_p1 = pneg %p831_p10 }
  0x24   : > { %p839_p8 = pnand %p838_p4, %p832_p1 }
  0x26   : > { %842 = shalt.err (!%p839_p8)
}
  0x27   : > { %s946_s8 = smov 256   ;;  %s947_s9 = smov 16  }
  0x28   : > { %760 = dma.hbm_to_vmem [thread:$0]  (!%p1028_p11), %s1236_s1, 4096, %s1021_s22, [#allocation6], %s946_s8, %s946_s8, %s947_s9  }
  0x29   : > { %p25_p2 = scmp.eq.s32.totalorder %s24_s26, 0  ;;  %p34_p1 = scmp.ne.s32.totalorder %s939_s14, %s935_s13 }
  0x2a   : > { %p35_p4 = scmp.eq.s32.totalorder %s943_s15, 0  ;;  %p770_p6 = scmp.lt.s32.totalorder %s943_s15, 2 }
  0x2b   : > { %s1064_s17 = scalar_select %p25_p2, %s939_s14, %s27_s25  }
  0x2c   : > { %p36_p8 = por %p35_p4, %p34_p1  ;;  %p1246_p10 = scmp.eq.s32.totalorder %s998_s16, 1 }
  0x2d   : > { %s148_s27 = sand.u32 1, %s939_s14   ;;  %s561_s28 = smul.u32 640, %s943_s15 }
  0x2e   : > { %p1068_p12 = por %p1246_p10, %p34_p1  ;;  %s747_s29 = smul.u32 40, %s148_s27 }
  0x2f   : > { %s1077_s4 = scalar_lea.hbm %s1235_s0, %s561_s28  ;;  %p1079_p11 = pnand %p770_p6, %p36_p8 }
  0x30   : > { %s152_s25 = scalar_lea.vmem [#allocation2], %s747_s29  ;;  %s1085_s5 = scalar_lea.sflag [#allocation3], %s148_s27 }
  0x31   : > { %s159_s26 = sshll.u32 %s152_s25, 4  ;;  %s843_s6 = scalar_lea.hbm %s1077_s4, 640  ;;  %s1083_s26 = int_to_ptr.vmem [resolvable:$true] %s159_s26 }
  0x32   : > { %p844_p13 = scmp.ne.s32.totalorder %s1077_s4, %s843_s6  ;;  %p845_p0 = pneg %p1079_p11 }
  0x33   : > { %s848_s9 = scalar_lea.hbm %s1235_s0, 1280  ;;  %p849_p7 = scmp.lt.u32.totalorder %s1077_s4, %s1235_s0 }
  0x34   : > { %p846_p3 = pnand %p845_p0, %p844_p13  ;;  %p850_p9 = scmp.lt.u32.totalorder %s848_s9, %s843_s6 }
  0x35   : > { %p852_p1 = scmp.lt.u32.totalorder %s843_s6, %s1077_s4 }
  0x36   : > { %p847_p5 = pneg %p846_p3  ;;  %p851_p2 = por %p850_p9, %p849_p7 }
  0x38   : > { %p853_p4 = por %p852_p1, %p851_p2 }
  0x3a   : > { %p854_p6 = pnand %p853_p4, %p847_p5 }
  0x3c   : > { %857 = shalt.err (!%p854_p6)
}
  0x3d   : > { %s858_s27 = scalar_lea.vmem %s1083_s26, 640  ;;  %s948_s28 = smov [#allocation2]  }
  0x3e   : > { %p859_p8 = scmp.ne.s32.totalorder %s1083_s26, %s858_s27  ;;  %s863_s29 = sshll.u32 %s948_s28, 4  ;;  %s864_s29 = int_to_ptr.vmem [resolvable:$false] %s863_s29 }
  0x3f   : > { %s865_s23 = scalar_lea.vmem %s864_s29, 1280  ;;  %p866_p3 = scmp.lt.s32.totalorder %s1083_s26, %s864_s29 }
  0x40   : > { %p861_p10 = pnand %p859_p8, %p845_p0  ;;  %p867_p7 = scmp.lt.s32.totalorder %s865_s23, %s858_s27 }
  0x42   : > { %p862_p13 = pneg %p861_p10  ;;  %p868_p9 = por %p867_p7, %p866_p3 }
  0x44   : > { %p869_p2 = pnand %p868_p9, %p862_p13 }
  0x46   : > { %872 = shalt.err (!%p869_p2)
}
  0x47   : > { %s949_s30 = smov 128   ;;  %s950_s25 = smov 8  }
  0x48   : > { %764 = dma.hbm_to_vmem [thread:$0]  (!%p1079_p11), %s1077_s4, 640, %s1083_s26, %s1085_s5, %s949_s30, %s949_s30, %s950_s25  }
  0x49   : > { %p1249_p0 = scmp.ne.s32.totalorder %s1244_s20, 0 }
  0x4a   : > { %s1116_s6 = sand.u32 (!%p1249_p0), 1, %s935_s13   ;;  %p1250_p5 = scmp.ne.s32.totalorder (!%p1249_p0), %s1242_s18, 0 }
  0x4b   : > { %171 = sbr.rel (%p1249_p0) target bundleno = 583 (0x247), region = 32  ;;  %s174_s8 = scalar_lea.sflag (!%p1249_p0), [#allocation3], %s1116_s6 }
  0x4c   : > { %s748_s7 = smul.u32 (!%p1249_p0), 40, %s1116_s6 }
  0x4e   : > { %s1122_s9 = scalar_lea.vmem (!%p1249_p0), [#allocation2], %s748_s7 }
  0x52   : > { %918 = dma.done.wait (%p1250_p5), %s174_s8, 640  }
  0x53   : > { %920 = vsyncadd (%p1250_p5), %s174_s8, 4294966656  ;;  %p1251_p11 = scmp.eq.s32.totalorder %s998_s16, 0 }
  0x55   : > { %922 = dma.done.wait (%p1251_p11), [#allocation6], 4096   ;;  %p1252_p1 = pmov %p1251_p11 }
  0x56   : > { %v951_v0 = vmov 0.0|0.0   ;;  %vm952_vm0 = vmmov 0   ;;  %v953_v1 = vmov 0.0   ;;  %v211_v2 = vld [vmem:[#allocation5] sm:$0xff]  ;;  %v212_v3 = vld [vmem:[#allocation5 + $0x10] sm:$0xff]  ;;  %v227_v11 = vld [vmem:[#allocation5 + $0x8] sm:$0xff] }
  0x57   : > { %924 = vsyncadd (%p1252_p1), [#allocation6], 4294963200  ;;  %699 = vmatprep.subr.bf16.mxu0 %v951_v0  ;;  %637 = vmatprep.mubr.msk.f32.mxu0 %vm952_vm0, %v953_v1  ;;  %v213_v4 = vld [vmem:[#allocation5 + $0x20] sm:$0xff]  ;;  %v700_v5 = vpack.c.bf16 %v212_v3, %v211_v2  ;;  %v214_v6 = vld [vmem:[#allocation5 + $0x30] sm:$0xff]  ;;  %s203_s26 = scalar_lea.vmem [#allocation7], %s748_s7  ;;  %s562_s10 = smul.u32 640, %s998_s16 }
  0x58   : > { %723 = vmatprep.subr.bf16.mxu1 %v951_v0  ;;  %684 = vmatprep.mubr.msk.f32.mxu1 %vm952_vm0, %v953_v1  ;;  %v703_v7 = vpack.c.bf16 %v214_v6, %v213_v4  ;;  %v215_v8 = vld [vmem:[#allocation5 + $0x40] sm:$0xff]  ;;  %v216_v9 = vld [vmem:[#allocation5 + $0x50] sm:$0xff]  ;;  %v228_v12 = vld [vmem:[#allocation5 + $0x18] sm:$0xff]  ;;  %s466_s5 = sshll.u32 %s203_s26, 4  ;;  %s453_s29 = scalar_lea.sflag [#allocation4], %s1116_s6  ;;  %s1185_s5 = int_to_ptr.vmem [resolvable:$true] %s466_s5 }
  0x59   : > { %701 = vmatpush3.bf16.msra.mxu0 %v700_v5  ;;  %v706_v10 = vpack.c.bf16 %v216_v9, %v215_v8  ;;  %v229_v13 = vld [vmem:[#allocation5 + $0x28] sm:$0xff]  ;;  %v217_v14 = vld [vmem:[#allocation5 + $0x60] sm:$0xff]  ;;  %v218_v15 = vld [vmem:[#allocation5 + $0x70] sm:$0xff]  ;;  %v724_v16 = vpack.c.bf16 %v228_v12, %v227_v11  ;;  %s1190_s28 = scalar_lea.hbm %s1238_s3, %s562_s10  ;;  %s873_s16 = scalar_lea.vmem %s1185_s5, 640 }
  0x5a   : > { %702 = vmatprep.subr.bf16.mxu0 %v951_v0  ;;  %v230_v17 = vld [vmem:[#allocation5 + $0x38] sm:$0xff]  ;;  %v709_v19 = vpack.c.bf16 %v218_v15, %v217_v14  ;;  %v231_v20 = vld [vmem:[#allocation5 + $0x48] sm:$0xff]  ;;  %v219_v22 = vld [vmem:[#allocation5 + $0x80] sm:$0xff]  ;;  %p874_p4 = scmp.ne.s32.totalorder %s1185_s5, %s873_s16  ;;  %s954_s23 = smov [#allocation7]  }
  0x5b   : > { %725 = vmatpush3.bf16.msra.mxu1 %v724_v16  ;;  %v727_v18 = vpack.c.bf16 %v230_v17, %v229_v13  ;;  %v232_v21 = vld [vmem:[#allocation5 + $0x58] sm:$0xff]  ;;  %v220_v23 = vld [vmem:[#allocation5 + $0x90] sm:$0xff]  ;;  %v233_v26 = vld [vmem:[#allocation5 + $0x68] sm:$0xff]  ;;  %s877_s30 = sshll.u32 %s954_s23, 4  ;;  %s878_s30 = int_to_ptr.vmem [resolvable:$false] %s877_s30 }
  0x5c   : > { %726 = vmatprep.subr.bf16.mxu1 %v951_v0  ;;  %v730_v24 = vpack.c.bf16 %v232_v21, %v231_v20  ;;  %v712_v25 = vpack.c.bf16 %v220_v23, %v219_v22  ;;  %v234_v27 = vld [vmem:[#allocation5 + $0x78] sm:$0xff]  ;;  %v221_v28 = vld [vmem:[#allocation5 + $0xa0] sm:$0xff]  ;;  %v222_v29 = vld [vmem:[#allocation5 + $0xb0] sm:$0xff]  ;;  %p875_p6 = pnand %p874_p4, %p1068_p12  ;;  %s879_s25 = scalar_lea.vmem %s878_s30, 1280 }
  0x5d   : > { %704 = vmatpush3.bf16.msra.mxu0 %v703_v7  ;;  %v733_v30 = vpack.c.bf16 %v234_v27, %v233_v26  ;;  %v715_v31 = vpack.c.bf16 %v222_v29, %v221_v28  ;;  %v235_v32 = vld [vmem:[#allocation5 + $0x88] sm:$0xff]  ;;  %v236_v33 = vld [vmem:[#allocation5 + $0x98] sm:$0xff]  ;;  %v223_v34 = vld [vmem:[#allocation5 + $0xc0] sm:$0xff]  ;;  %p880_p10 = scmp.lt.s32.totalorder %s1185_s5, %s878_s30  ;;  %p881_p13 = scmp.lt.s32.totalorder %s879_s25, %s873_s16 }
  0x5e   : > { %705 = vmatprep.subr.bf16.mxu0 %v951_v0  ;;  %v224_v35 = vld [vmem:[#allocation5 + $0xd0] sm:$0xff]  ;;  %v736_v36 = vpack.c.bf16 %v236_v33, %v235_v32  ;;  %v237_v38 = vld [vmem:[#allocation5 + $0xa8] sm:$0xff]  ;;  %v238_v39 = vld [vmem:[#allocation5 + $0xb8] sm:$0xff]  ;;  %p876_p8 = pneg %p875_p6 }
  0x5f   : > { %728 = vmatpush3.bf16.msra.mxu1 %v727_v18  ;;  %v718_v37 = vpack.c.bf16 %v224_v35, %v223_v34  ;;  %v225_v40 = vld [vmem:[#allocation5 + $0xe0] sm:$0xff]  ;;  %v226_v41 = vld [vmem:[#allocation5 + $0xf0] sm:$0xff]  ;;  %v739_v42 = vpack.c.bf16 %v238_v39, %v237_v38  ;;  %v239_v44 = vld [vmem:[#allocation5 + $0xc8] sm:$0xff]  ;;  %p882_p3 = por %p881_p13, %p880_p10 }
  0x60   : > { %729 = vmatprep.subr.bf16.mxu1 %v951_v0  ;;  %v721_v43 = vpack.c.bf16 %v226_v41, %v225_v40  ;;  %v240_v45 = vld [vmem:[#allocation5 + $0xd8] sm:$0xff]  ;;  %v208_v49 = vld [vmem:[%s1122_s9 + $0x10] sm:$0xff]  ;;  %v209_v50 = vld [vmem:[%s1122_s9 + $0x18] sm:$0xff] }
  0x61   : > { %707 = vmatpush3.bf16.msra.mxu0 %v706_v10  ;;  %v742_v46 = vpack.c.bf16 %v240_v45, %v239_v44  ;;  %v206_v47 = vld [vmem:[%s1122_s9] sm:$0xff]  ;;  %v207_v48 = vld [vmem:[%s1122_s9 + $0x8] sm:$0xff]  ;;  %v241_v52 = vld [vmem:[#allocation5 + $0xe8] sm:$0xff]  ;;  %p883_p7 = pnand %p882_p3, %p876_p8 }
  0x62   : > { %708 = vmatprep.subr.bf16.mxu0 %v951_v0  ;;  %v1165_v51 = vld [vmem:[%s1122_s9 + $0x20] sm:$0xff] }
  0x63   : > { %731 = vmatpush3.bf16.msra.mxu1 %v730_v24  ;;  %v242_v53 = vld [vmem:[#allocation5 + $0xf8] sm:$0xff]  ;;  %v556_v55 = vld [vmem:[%s1237_s2] ss:$0 sm:$0xff]  ;;  %v557_v13 = vld [vmem:[%s1237_s2 + $0x1] ss:$0 sm:$0xff] }
  0x64   : > { %732 = vmatprep.subr.bf16.mxu1 %v951_v0  ;;  %v745_v54 = vpack.c.bf16 %v242_v53, %v241_v52 }
  0x65   : > { %710 = vmatpush3.bf16.msra.mxu0 %v709_v19 }
  0x66   : > { %711 = vmatprep.subr.bf16.mxu0 %v951_v0 }
  0x67   : > { %734 = vmatpush3.bf16.msra.mxu1 %v733_v30 }
  0x68   : > { %735 = vmatprep.subr.bf16.mxu1 %v951_v0 }
  0x69   : > { %713 = vmatpush3.bf16.msra.mxu0 %v712_v25 }
  0x6a   : > { %714 = vmatprep.subr.bf16.mxu0 %v951_v0 }
  0x6b   : > { %737 = vmatpush3.bf16.msra.mxu1 %v736_v36 }
  0x6c   : > { %738 = vmatprep.subr.bf16.mxu1 %v951_v0 }
  0x6d   : > { %716 = vmatpush3.bf16.msra.mxu0 %v715_v31 }
  0x6e   : > { %717 = vmatprep.subr.bf16.mxu0 %v951_v0 }
  0x6f   : > { %740 = vmatpush3.bf16.msra.mxu1 %v739_v42 }
  0x70   : > { %741 = vmatprep.subr.bf16.mxu1 %v951_v0 }
  0x71   : > { %719 = vmatpush3.bf16.msra.mxu0 %v718_v37 }
  0x72   : > { %720 = vmatprep.subr.bf16.mxu0 %v951_v0 }
  0x73   : > { %743 = vmatpush3.bf16.msra.mxu1 %v742_v46 }
  0x74   : > { %744 = vmatprep.subr.bf16.mxu1 %v951_v0 }
  0x75   : > { %722 = vmatpush3.bf16.msra.mxu0 %v721_v43 }
  0x77   : > { %746 = vmatpush3.bf16.msra.mxu1 %v745_v54 }
  0x78   : > { %638 = vmatmul.mubr.f32.vlgmr.msra.gmra.mrb[0].mxu0 %v206_v47 }
  0x79   : > { %640 = vmatprep.mubr.msk.f32.mxu0 %vm952_vm0, %v953_v1 }
  0x7c   : > { %641 = vmatmul.mubr.f32.gmra.mrb[2].mxu0 %v207_v48 }
  0x7d   : > { %643 = vmatprep.mubr.msk.f32.mxu0 %vm952_vm0, %v953_v1 }
  0x80   : > { %644 = vmatmul.mubr.f32.gmra.mrb[4].mxu0 %v208_v49 }
  0x81   : > { %646 = vmatprep.mubr.msk.f32.mxu0 %vm952_vm0, %v953_v1 }
  0x84   : > { %647 = vmatmul.mubr.f32.gmra.mrb[6].mxu0 %v209_v50 }
  0x85   : > { %649 = vmatprep.mubr.msk.f32.mxu0 %vm952_vm0, %v953_v1 }
  0x88   : > { %650 = vmatmul.mubr.f32.gmra.mrb[8].mxu0 %v1165_v51 }
 0x14b   : > { %v317_v56 = vpop.f32.mrb[0].mxu0 }
 0x14c   : > { %v318_v57 = vadd.f32 %v556_v55, %v317_v56  ;;  %v639_v58 = vpop.f32.mrb[1].mxu0 }
 0x14e   : > { %v341_v59 = vmax.f32 %v318_v57, 0.0 }
 0x14f   : > { %v322_v60 = vpop.f32.mrb[2].mxu0 }
 0x150   : > { %v323_v61 = vadd.f32 %v556_v55, %v322_v60  ;;  %v642_v62 = vpop.f32.mrb[3].mxu0  ;;  %685 = vmatmul.mubr.f32.vlgmr.msra.gmra.mrb[0].mxu1 %v341_v59 }
 0x151   : > { %687 = vmatprep.mubr.msk.f32.mxu1 %vm952_vm0, %v953_v1 }
 0x152   : > { %v342_v63 = vmax.f32 %v323_v61, 0.0 }
 0x153   : > { %v327_v0 = vpop.f32.mrb[4].mxu0 }
 0x154   : > { %v328_v2 = vadd.f32 %v556_v55, %v327_v0  ;;  %v645_v3 = vpop.f32.mrb[5].mxu0  ;;  %688 = vmatmul.mubr.f32.gmra.mrb[2].mxu1 %v342_v63 }
 0x155   : > { %690 = vmatprep.mubr.msk.f32.mxu1 %vm952_vm0, %v953_v1 }
 0x156   : > { %v343_v4 = vmax.f32 %v328_v2, 0.0 }
 0x157   : > { %v332_v5 = vpop.f32.mrb[6].mxu0 }
 0x158   : > { %v333_v6 = vadd.f32 %v556_v55, %v332_v5  ;;  %v648_v7 = vpop.f32.mrb[7].mxu0  ;;  %691 = vmatmul.mubr.f32.gmra.mrb[4].mxu1 %v343_v4 }
 0x159   : > { %693 = vmatprep.mubr.msk.f32.mxu1 %vm952_vm0, %v953_v1 }
 0x15a   : > { %v344_v8 = vmax.f32 %v333_v6, 0.0 }
 0x15b   : > { %v337_v9 = vpop.f32.mrb[8].mxu0 }
 0x15c   : > { %v338_v10 = vadd.f32 %v556_v55, %v337_v9  ;;  %v651_v11 = vpop.f32.mrb[9].mxu0  ;;  %694 = vmatmul.mubr.f32.gmra.mrb[6].mxu1 %v344_v8 }
 0x15d   : > { %696 = vmatprep.mubr.msk.f32.mxu1 %vm952_vm0, %v953_v1 }
 0x15e   : > { %v345_v12 = vmax.f32 %v338_v10, 0.0 }
 0x160   : > { %697 = vmatmul.mubr.f32.gmra.mrb[8].mxu1 %v345_v12 }
 0x223   : > { %v418_v14 = vpop.f32.mrb[0].mxu1 }
 0x224   : > { %v419_v15 = vadd.f32 %v557_v13, %v418_v14  ;;  %v686_v16 = vpop.f32.mrb[1].mxu1 }
 0x226   : > { %v442_v17 = vadd.f32 %v419_v15, %v206_v47 }
 0x227   : > { %v423_v18 = vpop.f32.mrb[2].mxu1 }
 0x228   : > { %447 = vst [vmem:[%s203_s26] sm:$0xff] %v442_v17  ;;  %v424_v19 = vadd.f32 %v557_v13, %v423_v18  ;;  %v689_v20 = vpop.f32.mrb[3].mxu1 }
 0x22a   : > { %v443_v21 = vadd.f32 %v424_v19, %v207_v48 }
 0x22b   : > { %v428_v22 = vpop.f32.mrb[4].mxu1 }
 0x22c   : > { %448 = vst [vmem:[%s203_s26 + $0x8] sm:$0xff] %v443_v21  ;;  %v429_v1 = vadd.f32 %v557_v13, %v428_v22  ;;  %v692_v23 = vpop.f32.mrb[5].mxu1 }
 0x22e   : > { %v444_v24 = vadd.f32 %v429_v1, %v208_v49 }
 0x22f   : > { %v433_v25 = vpop.f32.mrb[6].mxu1 }
 0x230   : > { %449 = vst [vmem:[%s203_s26 + $0x10] sm:$0xff] %v444_v24  ;;  %v434_v26 = vadd.f32 %v557_v13, %v433_v25  ;;  %v695_v27 = vpop.f32.mrb[7].mxu1 }
 0x232   : > { %v445_v28 = vadd.f32 %v434_v26, %v209_v50 }
 0x233   : > { %v438_v29 = vpop.f32.mrb[8].mxu1 }
 0x234   : > { %450 = vst [vmem:[%s203_s26 + $0x18] sm:$0xff] %v445_v28  ;;  %v439_v30 = vadd.f32 %v557_v13, %v438_v29  ;;  %v698_v31 = vpop.f32.mrb[9].mxu1 }
 0x236   : > { %v446_v32 = vadd.f32 %v439_v30, %v1165_v51 }
 0x238   : > { %451 = vst [vmem:[%s203_s26 + $0x20] sm:$0xff] %v446_v32 }
 0x239   : > { %886 = shalt.err (!%p883_p7)
}
 0x23a   : > { %s887_s7 = scalar_lea.hbm %s1190_s28, 640  ;;  %s891_s18 = scalar_lea.hbm %s1238_s3, 1280 }
 0x23b   : > { %p888_p9 = scmp.ne.s32.totalorder %s1190_s28, %s887_s7  ;;  %p892_p5 = scmp.lt.u32.totalorder %s1190_s28, %s1238_s3 }
 0x23c   : > { %p893_p11 = scmp.lt.u32.totalorder %s891_s18, %s887_s7  ;;  %p895_p4 = scmp.lt.u32.totalorder %s887_s7, %s1190_s28 }
 0x23d   : > { %p889_p2 = pnand %p888_p9, %p1068_p12 }
 0x23e   : > { %p894_p1 = por %p893_p11, %p892_p5 }
 0x23f   : > { %p890_p0 = pneg %p889_p2 }
 0x240   : > { %p896_p6 = por %p895_p4, %p894_p1 }
 0x242   : > { %p897_p8 = pnand %p896_p6, %p890_p0 }
 0x244   : > { %900 = shalt.err (!%p897_p8)
}
 0x245   : > { %s955_s22 = smov 128   ;;  %s956_s26 = smov 8  }
 0x246   : > { %755 = dma.vmem_to_hbm [thread:$0]  (%p1068_p12), %s1185_s5, 640, %s1190_s28, %s453_s29, %s955_s22, %s955_s22, %s956_s26  }
 0x247 PF: > { %s481_s10 = sand.u32 1, %s931_s12   ;;  %p1253_p10 = scmp.ne.s32.totalorder %s1243_s19, 0 }
 0x248   : > { %p1254_p13 = scmp.ge.s32.totalorder %s943_s15, 2  ;;  %s482_s11 = scalar_lea.sflag [#allocation4], %s481_s10 }
 0x24a   : > { %p766_p3 = pnand %p1254_p13, %p1253_p10 }
 0x24c   : > { %926 = dma.done.wait (!%p766_p3), %s482_s11, 640  }
 0x24d   : > { %928 = vsyncadd (!%p766_p3), %s482_s11, 4294966656  ;;  %p17_p7 = scmp.ge.s32.totalorder %s1033_s24, 4   ;;  %s1255_s12 = smov %s935_s13 }
 0x24e   : > { %s1256_s13 = smov %s939_s14  ;;  %s1257_s14 = smov %s1064_s17 }
 0x24f   : > { %s1258_s15 = smov %s1033_s24  ;;  %19 = sbr.rel (!%p17_p7) target bundleno = 6 (0x6), region = 81 }
 0x256   :  { %487 = vsyncpa [#allocation3], 1 }
 0x257   :  { %489 = vsyncpa [#allocation3 + $0x1], 1 }
 0x258   :  { %490 = vsyncpa [#allocation6], 1 }
 0x259   :  { %491 = vsyncpa [#allocation4], 1 }
 0x25a   :  { %493 = vsyncpa [#allocation4 + $0x1], 1 }

</bundles_post_ra>
